<compile_context>
chip_gen: v7x
topology: tpu7x:2x2x1
jax: 0.10.0
libtpu: 0.0.40
codegen_flags: <defaults>
</compile_context>

<pallas_src>
import functools

import jax
import jax.numpy as jnp
import numpy as np
from jax.experimental import pallas as pl
from jax.experimental.pallas import tpu as pltpu

PAD_IDX = 1  # index of onmt.io.PAD_WORD in tgt_dict (synthetic choice)


def _softmax_last(x):
    m = jnp.max(x, axis=-1, keepdims=True)
    e = jnp.exp(x - m)
    return e * pl.reciprocal(jnp.sum(e, axis=-1, keepdims=True), approx=True)


def _fused_kernel(vocab, cvocab, ret_cvocab,
                  hid_ref, attn_ref, rattn_ref, smap_ref, rsmap_ref,
                  w_ref, b_ref, out_ref):
    """One (batch, t-tile) block: fused linear(+copy) -> softmaxes -> gating -> copy matmuls."""
    # [T, D] @ [D, V+3] (bf16 in, f32 accumulate); PAD mask already baked into bias.
    z = jnp.dot(hid_ref[...], w_ref[...],
                preferred_element_type=jnp.float32) + b_ref[...]        # [T, V+3]
    prob = _softmax_last(z[:, :vocab])                                   # p_softmax
    p_copy = _softmax_last(z[:, vocab:])                                 # p(z) over 3 choices

    out_ref[:, :vocab] = prob * p_copy[:, 0:1]                           # p(z=0) * p_softmax

    mul_attn = attn_ref[...] * p_copy[:, 1:2]                            # [T, slen]
    out_ref[:, vocab:vocab + cvocab] = jnp.dot(
        mul_attn, smap_ref[...], preferred_element_type=jnp.float32)     # copy_prob

    ret_mul_attn = rattn_ref[...] * p_copy[:, 2:3]                       # [T, rlen]
    out_ref[:, vocab + cvocab:] = jnp.dot(
        ret_mul_attn, rsmap_ref[...], preferred_element_type=jnp.float32)  # ret_copy_prob


def ret_copy_generator(hidden, attn, src_map, ret_attn, ret_src_map, params,
                       pad_idx=PAD_IDX, t_tile=None):
    """Mirrors RetCopyGenerator.forward.

    hidden:      [batch*tlen, input_size]   (rows ordered (t, b), batch fastest)
    attn:        [batch*tlen, slen]
    src_map:     [slen, batch, cvocab]
    ret_attn:    [batch*tlen, rlen]
    ret_src_map: [rlen, batch, ret_cvocab]
    returns (probs [batch*tlen, vocab+cvocab+ret_cvocab], cvocab)
    """
    N, input_size = hidden.shape
    _, slen = attn.shape
    _, batch, cvocab = src_map.shape
    _, rlen = ret_attn.shape
    _, _, ret_cvocab = ret_src_map.shape
    vocab = params["w"].shape[1]
    assert N % batch == 0
    tlen = N // batch
    v_total = vocab + cvocab + ret_cvocab

    # Lane-alignment requirements of this kernel (BlockSpec (8,128) rule and
    # lane-aligned stores into the fused output slab).
    # TODO(synk): pad unaligned input_size/slen/rlen/vocab/cvocab/ret_cvocab to
    #             multiples of 128 (and un-pad the result) for arbitrary shapes.
    for d in (input_size, slen, rlen, vocab, cvocab, ret_cvocab):
        assert d % 128 == 0, "fused kernel requires 128-multiple feature dims"

    if t_tile is None:
        t_tile = tlen if tlen <= 256 else 256
    assert tlen % t_tile == 0 and (t_tile % 8 == 0 or t_tile == tlen)
    n_t_tiles = tlen // t_tile

    # Fold linear and linear_copy into one matmul; bake the PAD -inf mask into
    # the bias (large finite negative keeps bf16/softmax math NaN-free).
    w_all = jnp.concatenate([params["w"], params["wc"]], axis=1).astype(jnp.bfloat16)
    b_all = jnp.concatenate([params["b"], params["bc"]], axis=1).astype(jnp.float32)
    b_all = b_all.at[0, pad_idx].set(-1e30)

    # Free row-major views: row (t*batch + b) of a [N, F] array is element
    # [t, b*F + f] of the [tlen, batch*F] view -> per-(t-tile, batch) blocks
    # need no HBM transpose.
    hid_v = hidden.astype(jnp.bfloat16).reshape(tlen, batch * input_size)
    attn_v = attn.reshape(tlen, batch * slen)
    rattn_v = ret_attn.reshape(tlen, batch * rlen)
    smap_v = src_map.reshape(slen, batch * cvocab)
    rsmap_v = ret_src_map.reshape(rlen, batch * ret_cvocab)

    def row_spec(feat):
        return pl.BlockSpec((t_tile, feat), lambda b, i: (i, b))

    out_v = pl.pallas_call(
        functools.partial(_fused_kernel, vocab, cvocab, ret_cvocab),
        grid=(batch, n_t_tiles),
        in_specs=[
            row_spec(input_size),                                        # hidden rows of batch b
            row_spec(slen),                                              # attn rows of batch b
            row_spec(rlen),                                              # ret_attn rows of batch b
            pl.BlockSpec((slen, cvocab), lambda b, i: (0, b)),           # src_map[:, b, :]
            pl.BlockSpec((rlen, ret_cvocab), lambda b, i: (0, b)),       # ret_src_map[:, b, :]
            pl.BlockSpec((input_size, vocab + 3), lambda b, i: (0, 0)),  # fused [w | wc]
            pl.BlockSpec((1, vocab + 3), lambda b, i: (0, 0)),           # fused bias (+PAD mask)
        ],
        out_specs=pl.BlockSpec((t_tile, v_total), lambda b, i: (i, b)),
        out_shape=jax.ShapeDtypeStruct((tlen, batch * v_total), jnp.float32),
        compiler_params=pltpu.CompilerParams(
            dimension_semantics=("parallel", "parallel")),
    )(hid_v, attn_v, rattn_v, smap_v, rsmap_v, w_all, b_all)

    return out_v.reshape(N, v_total), cvocab


def _reference(hidden, attn, src_map, ret_attn, ret_src_map, params, pad_idx):
    """Pure-JAX reference mirroring the PyTorch code exactly (f32)."""
    N = hidden.shape[0]
    _, batch, cvocab = src_map.shape
    _, _, ret_cvocab = ret_src_map.shape
    slen = attn.shape[1]
    rlen = ret_attn.shape[1]
    tlen = N // batch

    logits = hidden @ params["w"] + params["b"][0]
    logits = logits.at[:, pad_idx].set(-jnp.inf)
    prob = jax.nn.softmax(logits, axis=-1)
    p_copy = jax.nn.softmax(hidden @ params["wc"] + params["bc"][0], axis=-1)

    out_prob = prob * p_copy[:, 0:1]
    mul_attn = attn * p_copy[:, 1:2]
    copy_prob = jnp.einsum("bts,bsc->btc",
                           mul_attn.reshape(tlen, batch, slen).transpose(1, 0, 2),
                           src_map.transpose(1, 0, 2))
    copy_prob = copy_prob.transpose(1, 0, 2).reshape(N, cvocab)

    ret_mul_attn = ret_attn * p_copy[:, 2:3]
    ret_copy_prob = jnp.einsum("btr,brc->btc",
                               ret_mul_attn.reshape(tlen, batch, rlen).transpose(1, 0, 2),
                               ret_src_map.transpose(1, 0, 2))
    ret_copy_prob = ret_copy_prob.transpose(1, 0, 2).reshape(N, ret_cvocab)

    return jnp.concatenate([out_prob, copy_prob, ret_copy_prob], axis=1), cvocab


if __name__ == "__main__":
    # small synthetic shapes (feature dims chosen 128-aligned for the fused kernel)
    batch, tlen = 2, 8
    N = batch * tlen
    input_size = 128
    vocab = 256          # len(tgt_dict)
    slen, cvocab = 128, 128
    rlen, ret_cvocab = 128, 128

    key = jax.random.PRNGKey(0)
    ks = jax.random.split(key, 10)

    hidden = jax.random.normal(ks[0], (N, input_size), jnp.float32) * 0.5
    attn = jax.nn.softmax(jax.random.normal(ks[1], (N, slen), jnp.float32), axis=-1)
    ret_attn = jax.nn.softmax(jax.random.normal(ks[2], (N, rlen), jnp.float32), axis=-1)

    # sparse indicator maps: one-hot of a random extended-vocab index per source word
    src_idx = jax.random.randint(ks[3], (slen, batch), 0, cvocab)
    src_map = jax.nn.one_hot(src_idx, cvocab, dtype=jnp.float32)          # [slen, batch, cvocab]
    ret_idx = jax.random.randint(ks[4], (rlen, batch), 0, ret_cvocab)
    ret_src_map = jax.nn.one_hot(ret_idx, ret_cvocab, dtype=jnp.float32)  # [rlen, batch, ret_cvocab]

    # deterministic synthetic parameters (nn.Linear, stored transposed for matmul)
    params = {
        "w":  jax.random.normal(ks[5], (input_size, vocab), jnp.float32) * 0.1,  # linear.weight.T
        "b":  jax.random.normal(ks[6], (1, vocab), jnp.float32) * 0.1,           # linear.bias
        "wc": jax.random.normal(ks[7], (input_size, 3), jnp.float32) * 0.1,      # linear_copy.weight.T
        "bc": jax.random.normal(ks[8], (1, 3), jnp.float32) * 0.1,               # linear_copy.bias
    }

    out, ncopy = ret_copy_generator(hidden, attn, src_map, ret_attn, ret_src_map, params)
    out = jax.block_until_ready(out)

    ref, ncopy_ref = _reference(hidden, attn, src_map, ret_attn, ret_src_map, params, PAD_IDX)
    np.testing.assert_allclose(np.asarray(out), np.asarray(ref), atol=2e-2, rtol=2e-2)
    assert ncopy == ncopy_ref == cvocab
    assert out.shape == (N, vocab + cvocab + ret_cvocab)

    print("KERNEL_OK")
</pallas_src>

<mosaic_0001>
module attributes {stable_mosaic.version = 11 : i64} {
  func.func @_fused_kernel(%arg0: i32, %arg1: i32, %arg2: memref<8x128xbf16, #tpu.memory_space<vmem>>, %arg3: memref<8x128xf32, #tpu.memory_space<vmem>>, %arg4: memref<8x128xf32, #tpu.memory_space<vmem>>, %arg5: memref<128x128xf32, #tpu.memory_space<vmem>>, %arg6: memref<128x128xf32, #tpu.memory_space<vmem>>, %arg7: memref<128x259xbf16, #tpu.memory_space<vmem>>, %arg8: memref<1x259xf32, #tpu.memory_space<vmem>>, %arg9: memref<8x512xf32, #tpu.memory_space<vmem>>) attributes {dimension_semantics = [#tpu.dimension_semantics<parallel>, #tpu.dimension_semantics<parallel>], iteration_bounds = array<i64: 2, 1>, scalar_prefetch = 0 : i64, scratch_operands = 0 : i64, tpu.core_type = #tpu.core_type<tc>, window_params = [{transform_indices = @transform_0, window_bounds = array<i64: 8, 128>}, {transform_indices = @transform_1, window_bounds = array<i64: 8, 128>}, {transform_indices = @transform_2, window_bounds = array<i64: 8, 128>}, {transform_indices = @transform_3, window_bounds = array<i64: 128, 128>}, {transform_indices = @transform_4, window_bounds = array<i64: 128, 128>}, {pipeline_mode = #tpu.pipeline_mode<synchronous>, transform_indices = @transform_5, window_bounds = array<i64: 128, 259>}, {pipeline_mode = #tpu.pipeline_mode<synchronous>, transform_indices = @transform_6, window_bounds = array<i64: 1, 259>}, {transform_indices = @transform_7, window_bounds = array<i64: 8, 512>}]} {
    %c0 = arith.constant 0 : index
    %c0_0 = arith.constant 0 : index
    %0 = vector.load %arg2[%c0, %c0_0] : memref<8x128xbf16, #tpu.memory_space<vmem>>, vector<8x128xbf16>
    %c0_1 = arith.constant 0 : index
    %c0_2 = arith.constant 0 : index
    %1 = vector.load %arg7[%c0_1, %c0_2] : memref<128x259xbf16, #tpu.memory_space<vmem>>, vector<128x259xbf16>
    %cst = arith.constant dense<0.000000e+00> : vector<8x259xf32>
    %2 = tpu.matmul %0, %1, %cst {dimension_numbers = #tpu.dot_dimension_numbers<[1], [0], [0], [1], [0, 0, 1, 1], [], []>} : vector<8x128xbf16>, vector<128x259xbf16>, vector<8x259xf32> -> vector<8x259xf32>
    %c0_3 = arith.constant 0 : index
    %c0_4 = arith.constant 0 : index
    %3 = vector.load %arg8[%c0_3, %c0_4] : memref<1x259xf32, #tpu.memory_space<vmem>>, vector<1x259xf32>
    %4 = vector.broadcast %3 : vector<1x259xf32> to vector<8x259xf32>
    %5 = arith.addf %2, %4 : vector<8x259xf32>
    %6 = vector.extract_strided_slice %5 {offsets = [0, 0], sizes = [8, 256], strides = [1, 1]} : vector<8x259xf32> to vector<8x256xf32>
    %cst_5 = arith.constant dense<0xFF800000> : vector<8xf32>
    %7 = vector.multi_reduction <maximumf>, %6, %cst_5 [1] : vector<8x256xf32> to vector<8xf32>
    %8 = vector.shape_cast %7 : vector<8xf32> to vector<8x1xf32>
    %9 = vector.broadcast %8 : vector<8x1xf32> to vector<8x256xf32>
    %10 = arith.subf %6, %9 : vector<8x256xf32>
    %11 = math.exp %10 : vector<8x256xf32>
    %cst_6 = arith.constant dense<0.000000e+00> : vector<8xf32>
    %12 = vector.multi_reduction <add>, %11, %cst_6 [1] : vector<8x256xf32> to vector<8xf32>
    %13 = vector.shape_cast %12 : vector<8xf32> to vector<8x1xf32>
    %14 = tpu.reciprocal %13 {approx = true} : vector<8x1xf32> -> vector<8x1xf32>
    %15 = vector.broadcast %14 : vector<8x1xf32> to vector<8x256xf32>
    %16 = arith.mulf %11, %15 : vector<8x256xf32>
    %17 = vector.extract_strided_slice %5 {offsets = [0, 256], sizes = [8, 3], strides = [1, 1]} : vector<8x259xf32> to vector<8x3xf32>
    %cst_7 = arith.constant dense<0xFF800000> : vector<8xf32>
    %18 = vector.multi_reduction <maximumf>, %17, %cst_7 [1] : vector<8x3xf32> to vector<8xf32>
    %19 = vector.shape_cast %18 : vector<8xf32> to vector<8x1xf32>
    %20 = vector.broadcast %19 : vector<8x1xf32> to vector<8x3xf32>
    %21 = arith.subf %17, %20 : vector<8x3xf32>
    %22 = math.exp %21 : vector<8x3xf32>
    %cst_8 = arith.constant dense<0.000000e+00> : vector<8xf32>
    %23 = vector.multi_reduction <add>, %22, %cst_8 [1] : vector<8x3xf32> to vector<8xf32>
    %24 = vector.shape_cast %23 : vector<8xf32> to vector<8x1xf32>
    %25 = tpu.reciprocal %24 {approx = true} : vector<8x1xf32> -> vector<8x1xf32>
    %26 = vector.broadcast %25 : vector<8x1xf32> to vector<8x3xf32>
    %27 = arith.mulf %22, %26 : vector<8x3xf32>
    %28 = vector.extract_strided_slice %27 {offsets = [0, 0], sizes = [8, 1], strides = [1, 1]} : vector<8x3xf32> to vector<8x1xf32>
    %29 = vector.broadcast %28 : vector<8x1xf32> to vector<8x256xf32>
    %30 = arith.mulf %16, %29 : vector<8x256xf32>
    %c0_9 = arith.constant 0 : index
    %c0_10 = arith.constant 0 : index
    %31 = vector.load %arg9[%c0_9, %c0_10] : memref<8x512xf32, #tpu.memory_space<vmem>>, vector<8x256xf32>
    tpu.vector_store %arg9[%c0_9, %c0_10], %30 {strides = array<i32>} : memref<8x512xf32, #tpu.memory_space<vmem>>, vector<8x256xf32>,
    %c0_11 = arith.constant 0 : index
    %c0_12 = arith.constant 0 : index
    %32 = vector.load %arg3[%c0_11, %c0_12] : memref<8x128xf32, #tpu.memory_space<vmem>>, vector<8x128xf32>
    %33 = vector.extract_strided_slice %27 {offsets = [0, 1], sizes = [8, 1], strides = [1, 1]} : vector<8x3xf32> to vector<8x1xf32>
    %34 = vector.broadcast %33 : vector<8x1xf32> to vector<8x128xf32>
    %35 = arith.mulf %32, %34 : vector<8x128xf32>
    %c0_13 = arith.constant 0 : index
    %c0_14 = arith.constant 0 : index
    %36 = vector.load %arg5[%c0_13, %c0_14] : memref<128x128xf32, #tpu.memory_space<vmem>>, vector<128x128xf32>
    %cst_15 = arith.constant dense<0.000000e+00> : vector<8x128xf32>
    %37 = tpu.matmul %35, %36, %cst_15 {dimension_numbers = #tpu.dot_dimension_numbers<[1], [0], [0], [1], [0, 0, 1, 1], [], []>} : vector<8x128xf32>, vector<128x128xf32>, vector<8x128xf32> -> vector<8x128xf32>
    %c0_16 = arith.constant 0 : index
    %c256 = arith.constant 256 : index
    %38 = vector.load %arg9[%c0_16, %c256] : memref<8x512xf32, #tpu.memory_space<vmem>>, vector<8x128xf32>
    tpu.vector_store %arg9[%c0_16, %c256], %37 {strides = array<i32>} : memref<8x512xf32, #tpu.memory_space<vmem>>, vector<8x128xf32>,
    %c0_17 = arith.constant 0 : index
    %c0_18 = arith.constant 0 : index
    %39 = vector.load %arg4[%c0_17, %c0_18] : memref<8x128xf32, #tpu.memory_space<vmem>>, vector<8x128xf32>
    %40 = vector.extract_strided_slice %27 {offsets = [0, 2], sizes = [8, 1], strides = [1, 1]} : vector<8x3xf32> to vector<8x1xf32>
    %41 = vector.broadcast %40 : vector<8x1xf32> to vector<8x128xf32>
    %42 = arith.mulf %39, %41 : vector<8x128xf32>
    %c0_19 = arith.constant 0 : index
    %c0_20 = arith.constant 0 : index
    %43 = vector.load %arg6[%c0_19, %c0_20] : memref<128x128xf32, #tpu.memory_space<vmem>>, vector<128x128xf32>
    %cst_21 = arith.constant dense<0.000000e+00> : vector<8x128xf32>
    %44 = tpu.matmul %42, %43, %cst_21 {dimension_numbers = #tpu.dot_dimension_numbers<[1], [0], [0], [1], [0, 0, 1, 1], [], []>} : vector<8x128xf32>, vector<128x128xf32>, vector<8x128xf32> -> vector<8x128xf32>
    %c0_22 = arith.constant 0 : index
    %c384 = arith.constant 384 : index
    %45 = vector.load %arg9[%c0_22, %c384] : memref<8x512xf32, #tpu.memory_space<vmem>>, vector<8x128xf32>
    tpu.vector_store %arg9[%c0_22, %c384], %44 {strides = array<i32>} : memref<8x512xf32, #tpu.memory_space<vmem>>, vector<8x128xf32>,
    return
  }
  func.func @transform_0(%arg0: i32, %arg1: i32) -> (i32, i32) {
    %c0_i32 = arith.constant 0 : i32
    return %arg1, %arg0 : i32, i32
  }
  func.func @transform_1(%arg0: i32, %arg1: i32) -> (i32, i32) {
    %c0_i32 = arith.constant 0 : i32
    return %arg1, %arg0 : i32, i32
  }
  func.func @transform_2(%arg0: i32, %arg1: i32) -> (i32, i32) {
    %c0_i32 = arith.constant 0 : i32
    return %arg1, %arg0 : i32, i32
  }
  func.func @transform_3(%arg0: i32, %arg1: i32) -> (i32, i32) {
    %c0_i32 = arith.constant 0 : i32
    %c0_i32_0 = arith.constant 0 : i32
    return %c0_i32, %arg0 : i32, i32
  }
  func.func @transform_4(%arg0: i32, %arg1: i32) -> (i32, i32) {
    %c0_i32 = arith.constant 0 : i32
    %c0_i32_0 = arith.constant 0 : i32
    return %c0_i32, %arg0 : i32, i32
  }
  func.func @transform_5(%arg0: i32, %arg1: i32) -> (i32, i32) {
    %c0_i32 = arith.constant 0 : i32
    %c0_i32_0 = arith.constant 0 : i32
    %c0_i32_1 = arith.constant 0 : i32
    return %c0_i32, %c0_i32_0 : i32, i32
  }
  func.func @transform_6(%arg0: i32, %arg1: i32) -> (i32, i32) {
    %c0_i32 = arith.constant 0 : i32
    %c0_i32_0 = arith.constant 0 : i32
    %c0_i32_1 = arith.constant 0 : i32
    return %c0_i32, %c0_i32_0 : i32, i32
  }
  func.func @transform_7(%arg0: i32, %arg1: i32) -> (i32, i32) {
    %c0_i32 = arith.constant 0 : i32
    return %arg1, %arg0 : i32, i32
  }
}

</mosaic_0001>

<bundles_post_ra>
// kernel: tpu_custom_call.1
= control target key start
LH: loop header
LB: loop body
LE: loop exit
PB: predicated region body
PF: predicated region fallthrough
CT: control target
= control target key end

     0   :  { %s2029_s0 = inlined_call_operand.vmem [shape: bf16[8,256], index: 0, kind: input, shape index: {}]   ;;  %s2030_s1 = inlined_call_operand.vmem [shape: f32[8,256], index: 1, kind: input, shape index: {}]   ;;  %s2031_s2 = inlined_call_operand.vmem [shape: f32[8,256], index: 2, kind: input, shape index: {}]   ;;  %s2032_s3 = inlined_call_operand.vmem [shape: f32[128,256], index: 3, kind: input, shape index: {}]   ;;  %s2033_s4 = inlined_call_operand.hbm [shape: f32[128,256], index: 4, kind: input, shape index: {}]   ;;  %s2034_s5 = inlined_call_operand.vmem [shape: bf16[128,259], index: 5, kind: input, shape index: {}]   ;;  %s2035_s6 = inlined_call_operand.vmem [shape: f32[1,259], index: 6, kind: input, shape index: {}]   ;;  %s2036_s7 = inlined_call_operand.hbm [shape: f32[8,1024], index: 7, kind: output, shape index: {}]  }
   0x1   :  { %2039 = sst [smem:[#allocation9_spill]] %s2032_s3 }
   0x2   :  { %2040 = sst [smem:[#allocation10_spill]] %s2033_s4 }
   0x3   :  { %12 = vsyncpa [#allocation4], 0 }
   0x4   :  { %14 = vsyncpa [#allocation4 + $0x1], 0 }
   0x5   :  { %15 = vsyncpa [#allocation5], 0 }
   0x6   :  { %17 = vsyncpa [#allocation5 + $0x1], 0  ;;  %s1671_s24 = smov 0   ;;  %s1673_s25 = smov 0  }
   0x7   :  { %s1675_s26 = smov 0   ;;  %s1677_s27 = smov 0  }
   0x8   :  { %s1679_s28 = smov 0   ;;  %s1681_s29 = smov 0  }
   0x9 LB: > { %s1170_s30 = sadd.s32 4294967295, %s1618_s29   ;;  %s1171_s8 = sadd.s32 4294967294, %s1618_s29   ;;  %s1618_s29 = sphi %s1681_s29, %s23_s29   ;;  %s1614_s28 = sphi %s1679_s28, %s2054_s28   ;;  %s1610_s27 = sphi %s1677_s27, %s2053_s27   ;;  %s1606_s26 = sphi %s1675_s26, %s2052_s26   ;;  %s1602_s25 = sphi %s1673_s25, %s2051_s25   ;;  %s1598_s24 = sphi %s1671_s24, %s2050_s24  }
   0xa   : > { %s35_s9 = sadd.s32 1, %s1614_s28  ;;  %s126_s10 = sadd.s32 1, %s1606_s26 }
   0xb   : > { %p37_p0 = scmp.ge.s32.totalorder %s35_s9, 2  ;;  %p133_p1 = scmp.ne.s32.totalorder %s1606_s26, %s1602_s25 }
   0xc   : > { %p134_p2 = scmp.eq.s32.totalorder %s1618_s29, 0  ;;  %p165_p3 = scmp.ne.s32.totalorder %s1602_s25, %s1598_s24 }
   0xd   : > { %s2056_s9 = smov (%p37_p0, %s35_s9), 0  ;;  %p166_p5 = scmp.eq.s32.totalorder %s1170_s30, 0 }
   0xe   : > { %p1712_p4 = por %p134_p2, %p133_p1  ;;  %s123_s12 = ssub.s32 %s1614_s28, %s2056_s9 }
   0xf   : > { %p233_p6 = scmp.eq.s32.totalorder %s1170_s30, 1  ;;  %p124_p7 = scmp.eq.s32.totalorder %s123_s12, 0 }
  0x10   : > { %p1718_p8 = por %p166_p5, %p165_p3  ;;  %p239_p10 = scmp.eq.s32.totalorder %s1171_s8, 1 }
  0x11   : > { %p1722_p9 = por %p233_p6, %p133_p1  ;;  %p2037_p12 = scmp.ge.s32.totalorder %s1618_s29, 2 }
  0x12   : > { %s1727_s15 = scalar_select %p124_p7, %s1606_s26, %s126_s10  }
  0x13   : > { %s2043_s14 = scalar_select %p1722_p9, 1, 0 }
  0x14   : > { %p1729_p11 = por %p239_p10, %p165_p3  ;;  %261 = sbr.rel (%p2037_p12) target bundleno = 76 (0x4c), region = 24 }
  0x16   : > { %s2044_s16 = scalar_select %p1729_p11, 1, 0 }
  0x1b   : > { %297 = sbr.rel (!%p1712_p4) target bundleno = 45 (0x2d), region = 40  ;;  %s299_s17 = sand.u32 (%p1712_p4), 1, %s1606_s26  }
  0x1c   : > { %s1175_s18 = sshll.u32 (%p1712_p4), %s1614_s28, 3  ;;  %s1174_s19 = sshll.u32 (%p1712_p4), %s299_s17, 7 }
  0x1d   : > { %s2045_s3 = sld [smem:[#allocation9_spill]] (%p1712_p4)  ;;  %s301_s23 = scalar_lea.vmem (%p1712_p4), [#allocation2], %s1174_s19 }
  0x23   : > { %s1743_s22 = scalar_lea.vmem %s2045_s3, %s1175_s18 }
  0x24   : > { %v361_v0 = vld [vmem:[%s1743_s22] sm:$0xff]  ;;  %v363_v1 = vld [vmem:[%s1743_s22 + $0x10] sm:$0xff] }
  0x25   : > { %v365_v2 = vld [vmem:[%s1743_s22 + $0x20] sm:$0xff]  ;;  %362 = vst [vmem:[%s301_s23] sm:$0xff] %v361_v0  ;;  %364 = vst [vmem:[%s301_s23 + $0x8] sm:$0xff] %v363_v1  ;;  %v367_v3 = vld [vmem:[%s1743_s22 + $0x30] sm:$0xff] }
  0x26   : > { %366 = vst [vmem:[%s301_s23 + $0x10] sm:$0xff] %v365_v2  ;;  %v369_v4 = vld [vmem:[%s1743_s22 + $0x40] sm:$0xff]  ;;  %v371_v5 = vld [vmem:[%s1743_s22 + $0x50] sm:$0xff]  ;;  %368 = vst [vmem:[%s301_s23 + $0x18] sm:$0xff] %v367_v3 }
  0x27   : > { %370 = vst [vmem:[%s301_s23 + $0x20] sm:$0xff] %v369_v4  ;;  %372 = vst [vmem:[%s301_s23 + $0x28] sm:$0xff] %v371_v5  ;;  %v373_v6 = vld [vmem:[%s1743_s22 + $0x60] sm:$0xff]  ;;  %v375_v7 = vld [vmem:[%s1743_s22 + $0x70] sm:$0xff] }
  0x28   : > { %v377_v8 = vld [vmem:[%s1743_s22 + $0x80] sm:$0xff]  ;;  %374 = vst [vmem:[%s301_s23 + $0x30] sm:$0xff] %v373_v6  ;;  %376 = vst [vmem:[%s301_s23 + $0x38] sm:$0xff] %v375_v7  ;;  %v379_v9 = vld [vmem:[%s1743_s22 + $0x90] sm:$0xff] }
  0x29   : > { %378 = vst [vmem:[%s301_s23 + $0x40] sm:$0xff] %v377_v8  ;;  %v381_v10 = vld [vmem:[%s1743_s22 + $0xa0] sm:$0xff]  ;;  %v383_v11 = vld [vmem:[%s1743_s22 + $0xb0] sm:$0xff]  ;;  %380 = vst [vmem:[%s301_s23 + $0x48] sm:$0xff] %v379_v9 }
  0x2a   : > { %382 = vst [vmem:[%s301_s23 + $0x50] sm:$0xff] %v381_v10  ;;  %384 = vst [vmem:[%s301_s23 + $0x58] sm:$0xff] %v383_v11  ;;  %v385_v12 = vld [vmem:[%s1743_s22 + $0xc0] sm:$0xff]  ;;  %v387_v13 = vld [vmem:[%s1743_s22 + $0xd0] sm:$0xff] }
  0x2b   : > { %v389_v14 = vld [vmem:[%s1743_s22 + $0xe0] sm:$0xff]  ;;  %386 = vst [vmem:[%s301_s23 + $0x60] sm:$0xff] %v385_v12  ;;  %388 = vst [vmem:[%s301_s23 + $0x68] sm:$0xff] %v387_v13  ;;  %v391_v15 = vld [vmem:[%s1743_s22 + $0xf0] sm:$0xff] }
  0x2c   : > { %390 = vst [vmem:[%s301_s23 + $0x70] sm:$0xff] %v389_v14  ;;  %392 = vst [vmem:[%s301_s23 + $0x78] sm:$0xff] %v391_v15 }
  0x2d PF: > { %s399_s30 = sand.u32 1, %s1606_s26   ;;  %s1177_s8 = sshll.u32 %s1614_s28, 7 }
  0x2e   : > { %s1176_s10 = sshll.u32 %s399_s30, 7  ;;  %s2046_s4 = sld [smem:[#allocation10_spill]] }
  0x2f   : > { %s403_s19 = scalar_lea.vmem [#allocation3], %s1176_s10  ;;  %s1770_s21 = scalar_lea.sflag [#allocation4], %s399_s30 }
  0x30   : > { %s409_s20 = sshll.u32 %s403_s19, 4  ;;  %s1768_s20 = int_to_ptr.vmem [resolvable:$true] %s409_s20 }
  0x34   : > { %s1766_s18 = scalar_lea.hbm %s2046_s4, %s1177_s8  ;;  %s1512_s8 = scalar_lea.hbm %s2046_s4, 4096 }
  0x35   : > { %s1508_s22 = scalar_lea.hbm %s1766_s18, 2048  ;;  %p1513_p2 = scmp.lt.u32.totalorder %s1766_s18, %s2046_s4 }
  0x36   : > { %p1509_p13 = scmp.ne.s32.totalorder %s1766_s18, %s1508_s22  ;;  %p1514_p3 = scmp.lt.u32.totalorder %s1512_s8, %s1508_s22 }
  0x37   : > { %p1516_p6 = scmp.lt.u32.totalorder %s1508_s22, %s1766_s18 }
  0x38   : > { %p1510_p0 = pnand %p1509_p13, %p1712_p4  ;;  %p1515_p5 = por %p1514_p3, %p1513_p2 }
  0x3a   : > { %p1511_p1 = pneg %p1510_p0  ;;  %p1517_p7 = por %p1516_p6, %p1515_p5 }
  0x3c   : > { %p1518_p10 = pnand %p1517_p7, %p1511_p1 }
  0x3e   : > { %1521 = shalt.err (!%p1518_p10)
}
  0x3f   : > { %s1522_s30 = scalar_lea.vmem %s1768_s20, 2048  ;;  %s1620_s3 = smov [#allocation3]  }
  0x40   : > { %p1523_p13 = scmp.ne.s32.totalorder %s1768_s20, %s1522_s30  ;;  %s1526_s10 = sshll.u32 %s1620_s3, 4  ;;  %s1527_s10 = int_to_ptr.vmem [resolvable:$false] %s1526_s10 }
  0x41   : > { %s1528_s19 = scalar_lea.vmem %s1527_s10, 4096  ;;  %p1529_p11 = scmp.lt.s32.totalorder %s1768_s20, %s1527_s10 }
  0x42   : > { %p1524_p0 = pnand %p1523_p13, %p1712_p4  ;;  %p1530_p9 = scmp.lt.s32.totalorder %s1528_s19, %s1522_s30 }
  0x44   : > { %p1525_p12 = pneg %p1524_p0  ;;  %p1531_p2 = por %p1530_p9, %p1529_p11 }
  0x46   : > { %p1532_p3 = pnand %p1531_p2, %p1525_p12 }
  0x48   : > { %1535 = shalt.err (!%p1532_p3)
}
  0x49   : > { %s1621_s22 = smov 256   ;;  %s1622_s23 = smov 128  }
  0x4a   : > { %s1623_s8 = smov 8  }
  0x4b   : > { %1396 = dma.hbm_to_vmem [thread:$0]  (%p1712_p4), %s1766_s18, 2048, %s1768_s20, %s1770_s21, %s1621_s22, %s1622_s23, %s1623_s8  }
  0x4c PF: > { %p1178_p1 = scmp.ge.s32.totalorder %s1618_s29, 1  ;;  %p417_p5 = scmp.lt.s32.totalorder %s1618_s29, 3 }
  0x4e   : > { %p418_p6 = pnand %p1178_p1, %p417_p5 }
  0x4f   : > { %s1797_s12 = sand.u32 (!%p418_p6), 1, %s1602_s25  }
  0x50   : > { %421 = sbr.rel (%p418_p6) target bundleno = 1011 (0x3f3), region = 82  ;;  %s1179_s17 = sshll.u32 (!%p418_p6), %s1797_s12, 7 }
  0x51   : > { %s1800_s30 = scalar_lea.vmem (!%p418_p6), [#allocation2], %s1179_s17  ;;  %s431_s3 = scalar_lea.sflag (!%p418_p6), [#allocation4], %s1797_s12 }
  0x52   : > { %s1803_s10 = scalar_lea.vmem (!%p418_p6), [#allocation3], %s1179_s17 }
  0x57   : > { %1589 = dma.done.wait (%p1718_p8), %s431_s3, 2048  }
  0x58   : > { %1591 = vsyncadd (%p1718_p8), %s431_s3, 4294965248  ;;  %v1624_v16 = vmov 0.0   ;;  %vm1625_vm0 = vmmov 0   ;;  %v1626_v17 = vmov 0   ;;  %v1466_v18 = vld [vmem:[%s2034_s5 + $0x8] ss:$12 sps:$4 sm:$0xff]   ;;  %v554_v43 = vlaneseq }
  0x59   : > { %1258 = vmatprep.subr.bf16.mxu1 %v1624_v16  ;;  %1274 = vmatprep.mubr.msk.bf16.mxu1 %vm1625_vm0, %v1624_v16  ;;  %v1467_v19 = vld [vmem:[%s2034_s5 + $0x20] ss:$12 sps:$4 sm:$0xff]   ;;  %v1468_v20 = vld [vmem:[%s2034_s5 + $0x38] ss:$12 sps:$4 sm:$0xff]   ;;  %v1469_v23 = vld [vmem:[%s2034_s5 + $0x50] ss:$12 sps:$4 sm:$0xff]  }
  0x5a   : > { %729 = vmatprep.mubr.bf16.mxu0 %v1626_v17  ;;  %1464 = vset.pattern.permute.xlu0 %v1626_v17  ;;  %v1474_v21 = vld [vmem:[%s2034_s5 + $0x4] ss:$12 sps:$4 sm:$0xff]   ;;  %v1476_v22 = vld [vmem:[%s2034_s5] ss:$12 sps:$4 sm:$0xff]   ;;  %v1477_v24 = vld [vmem:[%s2034_s5 + $0x1c] ss:$12 sps:$4 sm:$0xff]  }
  0x5b   : > { %1259 = vmatpush3.bf16.msra.mxu1 %v1466_v18  ;;  %697 = vmatprep.subr.bf16.mxu0 %v1474_v21  ;;  %v1479_v25 = vld [vmem:[%s2034_s5 + $0x18] ss:$12 sps:$4 sm:$0xff]   ;;  %v1480_v26 = vld [vmem:[%s2034_s5 + $0x34] ss:$12 sps:$4 sm:$0xff]   ;;  %p495_p4 = scmp.lt.s32.totalorder %s1610_s27, 1  ;;  %v555_v44 = vshrl.u32 %v554_v43, 7 }
  0x5c   : > { %1260 = vmatprep.subr.bf16.mxu1 %v1624_v16  ;;  %698 = vmatpush1.bf16.msra.mxu0 %v1476_v22  ;;  %v1470_v27 = vld [vmem:[%s2034_s5 + $0x68] ss:$12 sps:$4 sm:$0xff]   ;;  %v1482_v28 = vld [vmem:[%s2034_s5 + $0x30] ss:$12 sps:$4 sm:$0xff]   ;;  %v1483_v29 = vld [vmem:[%s2034_s5 + $0x4c] ss:$12 sps:$4 sm:$0xff]  }
  0x5d   : > { %699 = vmatprep.subr.bf16.mxu0 %v1477_v24  ;;  %v1471_v30 = vld [vmem:[%s2034_s5 + $0x80] ss:$12 sps:$4 sm:$0xff]   ;;  %s1858_s13 = scalar_select %p495_p4, %s1610_s27, 1  ;;  %v1485_v31 = vld [vmem:[%s2034_s5 + $0x48] ss:$12 sps:$4 sm:$0xff]   ;;  %v564_v45 = vsub.s32 2, %v555_v44 }
  0x5e   : > { %v1486_v32 = vld [vmem:[%s2034_s5 + $0x64] ss:$12 sps:$4 sm:$0xff]   ;;  %v1488_v34 = vld [vmem:[%s2034_s5 + $0x60] ss:$12 sps:$4 sm:$0xff]   ;;  %v1489_v35 = vld [vmem:[%s2034_s5 + $0x7c] ss:$12 sps:$4 sm:$0xff]  }
  0x5f   : > { %1261 = vmatpush3.bf16.msra.mxu1 %v1467_v19  ;;  %v1472_v33 = vld [vmem:[%s2034_s5 + $0x98] ss:$12 sps:$4 sm:$0xff]   ;;  %s1182_s11 = sshll.u32 %s1858_s13, 2  ;;  %v1473_v36 = vld [vmem:[%s2034_s5 + $0xb0] ss:$12 sps:$4 sm:$0xff]   ;;  %vm793_vm1 = vcmask 23552  }
  0x60   : > { %1262 = vmatprep.subr.bf16.mxu1 %v1624_v16  ;;  %700 = vmatpush1.bf16.msra.mxu0 %v1479_v25  ;;  %s500_s3 = scalar_lea.vmem %s2029_s0, %s1182_s11  ;;  %v1491_v37 = vld [vmem:[%s2034_s5 + $0x78] ss:$12 sps:$4 sm:$0xff]   ;;  %v1492_v38 = vld [vmem:[%s2034_s5 + $0x94] ss:$12 sps:$4 sm:$0xff]   ;;  %v1494_v40 = vld [vmem:[%s2034_s5 + $0x90] ss:$12 sps:$4 sm:$0xff]  }
  0x61   : > { %701 = vmatprep.subr.bf16.mxu0 %v1480_v26  ;;  %v519_v39 = vld [vmem:[%s500_s3] sm:$0xf]  ;;  %v1495_v41 = vld [vmem:[%s2034_s5 + $0xac] ss:$12 sps:$4 sm:$0xff]   ;;  %v1497_v42 = vld [vmem:[%s2034_s5 + $0xa8] ss:$12 sps:$4 sm:$0xff]  }
  0x62   : > { %v552_v46 = vld [vmem:[%s2035_s6] sm:$0x7]  ;;  %v556_v61 = vsub.s32 0, %v555_v44  ;;  %v560_v62 = vsub.s32 1, %v555_v44  ;;  %v1627_v6 = vmov 1   ;;  %v821_v8 = vld [vmem:[%s1800_s30 + $0x8] sm:$0xff] }
  0x63   : > { %1263 = vmatpush3.bf16.msra.mxu1 %v1468_v20  ;;  %v565_v47 = vrot.slane %v552_v46, %v564_v45  ;;  %1462 = vset.pattern.permute.xlu1 %v1627_v6  ;;  %v820_v7 = vld [vmem:[%s1800_s30] sm:$0xff]  ;;  %v822_v9 = vld [vmem:[%s1800_s30 + $0x10] sm:$0xff]  ;;  %v1628_v10 = vmov 0.0|0.0   ;;  %v823_v12 = vld [vmem:[%s1800_s30 + $0x18] sm:$0xff]  ;;  %s1214_s4 = sshll.u32 %s1610_s27, 9  ;;  %p2047_p9 = scmp.ne.s32.totalorder %s2043_s14, 0 }
  0x64   : > { %1264 = vmatprep.subr.bf16.mxu1 %v1624_v16  ;;  %702 = vmatpush1.bf16.msra.mxu0 %v1482_v28  ;;  %v557_v63 = vrot.slane %v552_v46, %v556_v61  ;;  %v561_v0 = vrot.slane %v552_v46, %v560_v62  ;;  %v1349_v11 = vpack.c.bf16 %v821_v8, %v820_v7  ;;  %v913_v13 = vld [vmem:[%s1803_s10] sm:$0xff]  ;;  %v914_v14 = vld [vmem:[%s1803_s10 + $0x8] sm:$0xff]  ;;  %v916_v18 = vld [vmem:[%s1803_s10 + $0x18] sm:$0xff]  ;;  %s1982_s3 = scalar_lea.hbm %s2036_s7, %s1214_s4  ;;  %s1630_s27 = smov [#allocation6]  }
  0x65   : > { %703 = vmatprep.subr.bf16.mxu0 %v1483_v29  ;;  %v1373_v15 = vpack.c.bf16 %v914_v14, %v913_v13  ;;  %v1352_v17 = vpack.c.bf16 %v823_v12, %v822_v9  ;;  %v824_v19 = vld [vmem:[%s1800_s30 + $0x20] sm:$0xff]  ;;  %v825_v20 = vld [vmem:[%s1800_s30 + $0x28] sm:$0xff]  ;;  %v826_v25 = vld [vmem:[%s1800_s30 + $0x30] sm:$0xff]  ;;  %s1540_s18 = sshll.u32 %s1630_s27, 4  ;;  %s1541_s18 = int_to_ptr.vmem [resolvable:$false] %s1540_s18 }
  0x66   : > { %v917_v22 = vld [vmem:[%s1803_s10 + $0x20] sm:$0xff]  ;;  %v1355_v24 = vpack.c.bf16 %v825_v20, %v824_v19  ;;  %v827_v26 = vld [vmem:[%s1800_s30 + $0x38] sm:$0xff]  ;;  %v919_v28 = vld [vmem:[%s1803_s10 + $0x30] sm:$0xff] }
  0x67   : > { %1265 = vmatpush3.bf16.msra.mxu1 %v1469_v23  ;;  %v918_v23 = vld [vmem:[%s1803_s10 + $0x28] sm:$0xff]  ;;  %v920_v29 = vld [vmem:[%s1803_s10 + $0x38] sm:$0xff]  ;;  %v832_v43 = vld [vmem:[%s1800_s30 + $0x60] sm:$0xff] }
  0x68   : > { %1266 = vmatprep.subr.bf16.mxu1 %v1624_v16  ;;  %704 = vmatpush1.bf16.msra.mxu0 %v1485_v31  ;;  %v828_v31 = vld [vmem:[%s1800_s30 + $0x40] sm:$0xff]  ;;  %v833_v44 = vld [vmem:[%s1800_s30 + $0x68] sm:$0xff] }
  0x69   : > { %705 = vmatprep.subr.bf16.mxu0 %v1486_v32  ;;  %v829_v32 = vld [vmem:[%s1800_s30 + $0x48] sm:$0xff]  ;;  %v1367_v46 = vpack.c.bf16 %v833_v44, %v832_v43 }
  0x6b   : > { %1267 = vmatpush3.bf16.msra.mxu1 %v1470_v27  ;;  %v1379_v27 = vpack.c.bf16 %v918_v23, %v917_v22 }
  0x6c   : > { %1268 = vmatprep.subr.bf16.mxu1 %v1624_v16  ;;  %706 = vmatpush1.bf16.msra.mxu0 %v1488_v34  ;;  %v921_v34 = vld [vmem:[%s1803_s10 + $0x40] sm:$0xff] }
  0x6d   : > { %707 = vmatprep.subr.bf16.mxu0 %v1489_v35  ;;  %v922_v35 = vld [vmem:[%s1803_s10 + $0x48] sm:$0xff] }
  0x6f   : > { %1269 = vmatpush3.bf16.msra.mxu1 %v1471_v30  ;;  %v1358_v30 = vpack.c.bf16 %v827_v26, %v826_v25 }
  0x70   : > { %1270 = vmatprep.subr.bf16.mxu1 %v1624_v16  ;;  %708 = vmatpush1.bf16.msra.mxu0 %v1491_v37  ;;  %v830_v37 = vld [vmem:[%s1800_s30 + $0x50] sm:$0xff] }
  0x71   : > { %709 = vmatprep.subr.bf16.mxu0 %v1492_v38  ;;  %v831_v38 = vld [vmem:[%s1800_s30 + $0x58] sm:$0xff] }
  0x73   : > { %1271 = vmatpush3.bf16.msra.mxu1 %v1472_v33  ;;  %v1382_v33 = vpack.c.bf16 %v920_v29, %v919_v28 }
  0x74   : > { %1272 = vmatprep.subr.bf16.mxu1 %v1624_v16  ;;  %710 = vmatpush1.bf16.msra.mxu0 %v1494_v40  ;;  %v923_v40 = vld [vmem:[%s1803_s10 + $0x50] sm:$0xff] }
  0x75   : > { %711 = vmatprep.subr.bf16.mxu0 %v1495_v41  ;;  %v924_v41 = vld [vmem:[%s1803_s10 + $0x58] sm:$0xff] }
  0x76   : > { %v1388_v45 = vpack.c.bf16 %v924_v41, %v923_v40 }
  0x77   : > { %1273 = vmatpush3.bf16.msra.mxu1 %v1473_v36  ;;  %v1361_v36 = vpack.c.bf16 %v829_v32, %v828_v31 }
  0x78   : > { %712 = vmatpush1.bf16.msra.mxu0 %v1497_v42  ;;  %1372 = vmatprep.subr.bf16.mxu1 %v1628_v10  ;;  %v1364_v42 = vpack.c.bf16 %v831_v38, %v830_v37 }
  0x79   : > { %1348 = vmatprep.subr.bf16.mxu0 %v1628_v10 }
  0x7a   : > { %1275 = vmatmul.mubr.bf16.vlgmr.msra.gmra.mrb[0].mxu1 %v519_v39 }
  0x7b   : > { %1345 = vmatprep.mubr.msk.f32.mxu1 %vm1625_vm0, %v1624_v16  ;;  %730 = vmatmul.mubr.bf16.vlgmr.msra.gmra.mrb[0].mxu0 %v519_v39  ;;  %v1385_v39 = vpack.c.bf16 %v922_v35, %v921_v34 }
  0x7c   : > { %1310 = vmatprep.mubr.msk.f32.mxu0 %vm1625_vm0, %v1624_v16  ;;  %v915_v16 = vld [vmem:[%s1803_s10 + $0x10] sm:$0xff]  ;;  %1350 = vmatpush3.bf16.msra.mxu0 %v1349_v11 }
  0x7d   : > { %1351 = vmatprep.subr.bf16.mxu0 %v1628_v10  ;;  %1374 = vmatpush3.bf16.msra.mxu1 %v1373_v15  ;;  %v1376_v21 = vpack.c.bf16 %v916_v18, %v915_v16 }
  0x7e   : > { %1375 = vmatprep.subr.bf16.mxu1 %v1628_v10 }
  0x80   : > { %1353 = vmatpush3.bf16.msra.mxu0 %v1352_v17 }
  0x81   : > { %1354 = vmatprep.subr.bf16.mxu0 %v1628_v10  ;;  %1377 = vmatpush3.bf16.msra.mxu1 %v1376_v21 }
  0x82   : > { %1378 = vmatprep.subr.bf16.mxu1 %v1628_v10 }
  0x84   : > { %1356 = vmatpush3.bf16.msra.mxu0 %v1355_v24 }
  0x85   : > { %1357 = vmatprep.subr.bf16.mxu0 %v1628_v10  ;;  %1380 = vmatpush3.bf16.msra.mxu1 %v1379_v27 }
  0x86   : > { %1381 = vmatprep.subr.bf16.mxu1 %v1628_v10 }
  0x88   : > { %1359 = vmatpush3.bf16.msra.mxu0 %v1358_v30 }
  0x89   : > { %1360 = vmatprep.subr.bf16.mxu0 %v1628_v10  ;;  %1383 = vmatpush3.bf16.msra.mxu1 %v1382_v33 }
  0x8a   : > { %1384 = vmatprep.subr.bf16.mxu1 %v1628_v10 }
  0x8c   : > { %1362 = vmatpush3.bf16.msra.mxu0 %v1361_v36 }
  0x8d   : > { %1363 = vmatprep.subr.bf16.mxu0 %v1628_v10  ;;  %1386 = vmatpush3.bf16.msra.mxu1 %v1385_v39 }
  0x8e   : > { %1387 = vmatprep.subr.bf16.mxu1 %v1628_v10 }
  0x90   : > { %1365 = vmatpush3.bf16.msra.mxu0 %v1364_v42 }
  0x91   : > { %1366 = vmatprep.subr.bf16.mxu0 %v1628_v10  ;;  %1389 = vmatpush3.bf16.msra.mxu1 %v1388_v45 }
  0x92   : > { %1390 = vmatprep.subr.bf16.mxu1 %v1628_v10 }
  0x94   : > { %1368 = vmatpush3.bf16.msra.mxu0 %v1367_v46 }
  0x95   : > { %1369 = vmatprep.subr.bf16.mxu0 %v1628_v10 }
 0x14d   : > { %v772_v48 = vpop.f32.mrb[0].mxu1 }
 0x14e   : > { %v773_v49 = vadd.f32 %v772_v48, %v565_v47  ;;  %v1276_v50 = vpop.f32.mrb[1].mxu1  ;;  %v731_v54 = vpop.f32.mrb[0].mxu0  ;;  %v834_v48 = vld [vmem:[%s1800_s30 + $0x70] sm:$0xff] }
 0x14f   : > { %v775_v51 = vpop.f32.mrb[2].mxu1  ;;  %v733_v55 = vpop.f32.mrb[1].mxu0  ;;  %v1907_v1 = vadd.f32 %v731_v54, %v557_v63 }
 0x150   : > { %v1277_v52 = vpop.f32.mrb[3].mxu1  ;;  %v794_v53 = vsel %vm793_vm1, %v773_v49, -inf  ;;  %v735_v56 = vpop.f32.mrb[2].mxu0  ;;  %v1909_v2 = vadd.f32 %v733_v55, %v561_v0 }
 0x151   : > { %795 = vmax.xlane.f32.xlu0 %v794_v53  ;;  %v736_v57 = vpop.f32.mrb[3].mxu0  ;;  %v925_v52 = vld [vmem:[%s1803_s10 + $0x60] sm:$0xff]  ;;  %v926_v53 = vld [vmem:[%s1803_s10 + $0x68] sm:$0xff]  ;;  %v927_v56 = vld [vmem:[%s1803_s10 + $0x70] sm:$0xff] }
 0x152   : > { %v778_v5 = vmax.f32 %v1907_v1, %v1909_v2  ;;  %v1391_v55 = vpack.c.bf16 %v926_v53, %v925_v52  ;;  %v928_v57 = vld [vmem:[%s1803_s10 + $0x78] sm:$0xff] }
 0x154   : > { %1392 = vmatpush3.bf16.msra.mxu1 %v1391_v55 }
 0x155   : > { %1393 = vmatprep.subr.bf16.mxu1 %v1628_v10 }
 0x1de   : > { %v796_v58 = vpop.xlane.xlu0 %795 }
 0x1df   : > { %v797_v59 = vsub.f32 %v773_v49, %v796_v58  ;;  %v835_v49 = vld [vmem:[%s1800_s30 + $0x78] sm:$0xff]  ;;  %v1394_v58 = vpack.c.bf16 %v928_v57, %v927_v56  ;;  %s1183_s30 = sshll.u32 %s1858_s13, 3  ;;  %s1181_s13 = sshll.u32 %s1797_s12, 5 }
 0x1e0   : > { %v1370_v51 = vpack.c.bf16 %v835_v49, %v834_v48  ;;  %s508_s20 = scalar_lea.vmem %s2030_s1, %s1183_s30  ;;  %s516_s22 = scalar_lea.vmem %s2031_s2, %s1183_s30 }
 0x1e1   : > { %v798_v60 = vmul.f32 1.442695, %v797_v59  ;;  %v1629_v59 = vmov 2   ;;  %1395 = vmatpush3.bf16.msra.mxu1 %v1394_v58  ;;  %v814_v6 = vld [vmem:[%s508_s20] sm:$0xff]  ;;  %s492_s11 = scalar_lea.vmem [#allocation6], %s1181_s13  ;;  %s1001_s30 = scalar_lea.sflag [#allocation5], %s1797_s12 }
 0x1e2   : > { %1371 = vmatpush3.bf16.msra.mxu0 %v1370_v51  ;;  %s1017_s23 = sshll.u32 %s492_s11, 4  ;;  %s1542_s20 = scalar_lea.vmem %s1541_s18, 1024  ;;  %s1977_s23 = int_to_ptr.vmem [resolvable:$true] %s1017_s23 }
 0x1e3   : > { %1498 = vpow2.f32 %v798_v60  ;;  %s1536_s10 = scalar_lea.vmem %s1977_s23, 512  ;;  %p1543_p7 = scmp.lt.s32.totalorder %s1977_s23, %s1541_s18 }
 0x1e4   : > { %p1537_p8 = scmp.ne.s32.totalorder %s1977_s23, %s1536_s10  ;;  %p1544_p10 = scmp.lt.s32.totalorder %s1542_s20, %s1536_s10 }
 0x1e6   : > { %p1538_p11 = pnand %p1537_p8, %p2047_p9  ;;  %p1545_p13 = por %p1544_p10, %p1543_p7 }
 0x1e8   : > { %p1539_p12 = pneg %p1538_p11 }
 0x1ea   : > { %p1546_p0 = pnand %p1545_p13, %p1539_p12 }
 0x1ed   : > { %v1911_v3 = vpop.eup %1498 }
 0x1ee   : > { %v800_v4 = vsel %vm793_vm1, %v1911_v3, 0.0 }
 0x1ef   : > { %801 = vadd.xlane.f32.xlu0 %v800_v4 }
 0x1f3   : > { %779 = vmax.xlane.f32.xlu0 %v778_v5 }
 0x27c   : > { %v802_v47 = vpop.xlane.xlu0 %801 }
 0x27d   : > { %1500 = vrcp.f32 %v802_v47 }
 0x280   : > { %v780_v60 = vpop.xlane.xlu0 %779 }
 0x281   : > { %v781_v61 = vsub.f32 %v1907_v1, %v780_v60  ;;  %v782_v62 = vsub.f32 %v1909_v2, %v780_v60  ;;  %v907_v2 = vld [vmem:[%s516_s22] sm:$0xff] }
 0x283   : > { %v783_v63 = vmul.f32 1.442695, %v781_v61  ;;  %v785_v0 = vmul.f32 1.442695, %v782_v62 }
 0x285   : > { %1502 = vpow2.f32 %v783_v63 }
 0x286   : > { %1504 = vpow2.f32 %v785_v0 }
 0x287   : > { %v1501_v50 = vpop.eup %1500 }
 0x288   : > { %v804_v54 = vmul.f32 %v1501_v50, %v1911_v3 }
 0x28a   : > { %816 = vperm.xlu1 %1462, %v804_v54   ;;  %807 = vperm.xlu0 %1464, %v804_v54  }
 0x28e   : > { %1463 = vset.pattern.permute.xlu1 %v1629_v59  ;;  %1465 = vset.pattern.permute.xlu0 %v1629_v59 }
 0x28f   : > { %909 = vperm.xlu1 %1463, %v804_v54   ;;  %v1503_v3 = vpop.eup %1502 }
 0x290   : > { %v1505_v4 = vpop.eup %1504 }
 0x291   : > { %v787_v5 = vadd.f32 %v1505_v4, %v1503_v3 }
 0x2b3   : > { %788 = vadd.xlane.f32.xlu1 %v787_v5 }
 0x309   : > { %v817_v7 = vpop.permute.xlu1 %816  ;;  %v808_v14 = vpop.permute.xlu0 %807 }
 0x30a   : > { %v819_v1 = vmul.f32 %v817_v7, %v814_v6 }
 0x30c   : > { %1311 = vmatmul.mubr.f32.vlgmr.msra.gmra.mrb[4].mxu0 %v819_v1 }
 0x30e   : > { %v910_v8 = vpop.permute.xlu1 %909 }
 0x30f   : > { %v912_v9 = vmul.f32 %v910_v8, %v907_v2 }
 0x311   : > { %1346 = vmatmul.mubr.f32.vlgmr.msra.gmra.mrb[4].mxu1 %v912_v9 }
 0x340   : > { %v789_v10 = vpop.xlane.xlu1 %788 }
 0x341   : > { %1506 = vrcp.f32 %v789_v10 }
 0x34b   : > { %v1507_v11 = vpop.eup %1506 }
 0x34c   : > { %v791_v12 = vmul.f32 %v1507_v11, %v1503_v3  ;;  %v792_v13 = vmul.f32 %v1507_v11, %v1505_v4 }
 0x34e   : > { %v810_v15 = vmul.f32 %v808_v14, %v791_v12  ;;  %v811_v16 = vmul.f32 %v808_v14, %v792_v13 }
 0x350   : > { %812 = vst [vmem:[%s492_s11] sm:$0xff] %v810_v15  ;;  %813 = vst [vmem:[%s492_s11 + $0x8] sm:$0xff] %v811_v16 }
 0x3df   : > { %v902_v17 = vpop.f32.mrb[4].mxu0 }
 0x3e0   : > { %906 = vst [vmem:[%s492_s11 + $0x10] sm:$0xff] %v902_v17  ;;  %v1312_v18 = vpop.f32.mrb[5].mxu0 }
 0x3e4   : > { %v995_v19 = vpop.f32.mrb[4].mxu1 }
 0x3e5   : > { %999 = vst [vmem:[%s492_s11 + $0x18] sm:$0xff] %v995_v19  ;;  %v1347_v20 = vpop.f32.mrb[5].mxu1 }
 0x3e6   : > { %1549 = shalt.err (!%p1546_p0)
}
 0x3e7   : > { %s1550_s12 = scalar_lea.hbm %s1982_s3, 512  ;;  %s1554_s22 = scalar_lea.hbm %s2036_s7, 1024 }
 0x3e8   : > { %p1551_p2 = scmp.ne.s32.totalorder %s1982_s3, %s1550_s12  ;;  %p1555_p5 = scmp.lt.u32.totalorder %s1982_s3, %s2036_s7 }
 0x3e9   : > { %p1556_p6 = scmp.lt.u32.totalorder %s1554_s22, %s1550_s12  ;;  %p1558_p8 = scmp.lt.u32.totalorder %s1550_s12, %s1982_s3 }
 0x3ea   : > { %p1552_p3 = pnand %p1551_p2, %p2047_p9 }
 0x3eb   : > { %p1557_p4 = por %p1556_p6, %p1555_p5 }
 0x3ec   : > { %p1553_p1 = pneg %p1552_p3 }
 0x3ed   : > { %p1559_p11 = por %p1558_p8, %p1557_p4 }
 0x3ef   : > { %p1560_p12 = pnand %p1559_p11, %p1553_p1 }
 0x3f1   : > { %1563 = shalt.err (!%p1560_p12)
}
 0x3f2   : > { %1398 = dma.vmem_to_hbm [thread:$0]  (%p2047_p9), %s1977_s23, 512, %s1982_s3, %s1001_s30  }
 0x3f3 PF: > { %s1029_s4 = sand.u32 1, %s1598_s24   ;;  %p2048_p7 = scmp.ne.s32.totalorder %s2044_s16, 0 }
 0x3f4   : > { %p2049_p10 = scmp.ge.s32.totalorder %s1618_s29, 2  ;;  %s1030_s8 = scalar_lea.sflag [#allocation5], %s1029_s4 }
 0x3f6   : > { %p1401_p13 = pnand %p2049_p10, %p2048_p7 }
 0x3f8   : > { %1593 = dma.done.wait (!%p1401_p13), %s1030_s8, 512  }
 0x3f9   : > { %1595 = vsyncadd (!%p1401_p13), %s1030_s8, 4294966784  ;;  %s23_s29 = sadd.s32 1, %s1618_s29   ;;  %s2050_s24 = smov %s1602_s25 }
 0x3fa   : > { %p20_p0 = scmp.ge.s32.totalorder %s23_s29, 4   ;;  %s2051_s25 = smov %s1606_s26 }
 0x3fb   : > { %s2052_s26 = smov %s1727_s15  ;;  %s2053_s27 = smov %s1614_s28 }
 0x3fc   : > { %s2054_s28 = smov %s2056_s9  ;;  %22 = sbr.rel (!%p20_p0) target bundleno = 9 (0x9), region = 148 }
 0x403   :  { %1035 = vsyncpa [#allocation4], 1 }
 0x404   :  { %1037 = vsyncpa [#allocation4 + $0x1], 1 }
 0x405   :  { %1038 = vsyncpa [#allocation5], 1 }
 0x406   :  { %1040 = vsyncpa [#allocation5 + $0x1], 1 }

</bundles_post_ra>
